<compile_context>
chip_gen: v5e
topology: v5e:2x2
jax: 0.10.0
libtpu: 0.0.40
codegen_flags: <defaults>
</compile_context>

<pallas_src>
import functools
import math

import jax
import jax.numpy as jnp
from jax.experimental import pallas as pl
from jax.experimental.pallas import tpu as pltpu


def _self_attention_1d_kernel(
    x_ref,                     # (1, C, T)
    gn_w_ref, gn_b_ref,        # (C, 1), (C, 1)
    wq_ref, bq_ref,            # (C, C) [in, out], (1, C)
    wk_ref, bk_ref,
    wv_ref, bv_ref,
    wp_ref, bp_ref,
    o_ref,                     # (1, C, T)
    *, num_heads, gn_eps):
    x = x_ref[0].astype(jnp.float32)                     # (C, T) — also the residual
    C, T = x.shape

    # --- GroupNorm(num_groups=1): normalize over all (C, T) of this sample ---
    inv_n = 1.0 / float(C * T)
    mean = jnp.sum(x) * inv_n
    xc = x - mean
    var = jnp.sum(xc * xc) * inv_n
    xn = xc * jax.lax.rsqrt(var + gn_eps)
    xn = xn * gn_w_ref[...] + gn_b_ref[...]              # per-channel affine, (C,1) bcast

    # --- (T, C) layout and QKV projections (weights pre-transposed to (in, out)) ---
    h = xn.T                                             # (T, C)
    q = jnp.dot(h, wq_ref[...], preferred_element_type=jnp.float32) + bq_ref[...]
    k = jnp.dot(h, wk_ref[...], preferred_element_type=jnp.float32) + bk_ref[...]
    v = jnp.dot(h, wv_ref[...], preferred_element_type=jnp.float32) + bv_ref[...]

    head_dim = C // num_heads
    scale = 1.0 / math.sqrt(math.sqrt(head_dim))

    # --- per-head scaled dot-product attention (static loop over heads) ---
    head_outs = []
    for hidx in range(num_heads):
        lo = hidx * head_dim
        qh = q[:, lo:lo + head_dim] * scale              # (T, d)
        kh = k[:, lo:lo + head_dim] * scale              # (T, d)
        vh = v[:, lo:lo + head_dim]                      # (T, d)
        scores = jnp.einsum("td,sd->ts", qh, kh,
                            preferred_element_type=jnp.float32)      # (T, T)
        m = jnp.max(scores, axis=-1, keepdims=True)
        e = jnp.exp(scores - m)
        probs = e / jnp.sum(e, axis=-1, keepdims=True)
        head_outs.append(jnp.dot(probs, vh, preferred_element_type=jnp.float32))
    attn = head_outs[0] if num_heads == 1 else jnp.concatenate(head_outs, axis=-1)

    # --- output projection, back to (C, T), residual add ---
    out = jnp.dot(attn, wp_ref[...], preferred_element_type=jnp.float32) + bp_ref[...]
    # TODO(synk): nn.Dropout (train-mode RNG masking) not implemented; rate=0.0 /
    # eval mode makes it the identity.
    o_ref[0] = (out.T + x).astype(o_ref.dtype)


def self_attention_1d(x, gn_w, gn_b, wq, bq, wk, bk, wv, bv, wp, bp,
                      *, num_heads=1, gn_eps=1e-5):
    """Fused SelfAttention1d forward. x: (B, C, T); weights in PyTorch (out, in) format."""
    B, C, T = x.shape
    assert C % num_heads == 0

    kernel = functools.partial(_self_attention_1d_kernel,
                               num_heads=num_heads, gn_eps=gn_eps)

    def whole(shape):
        return pl.BlockSpec(shape, lambda b: (0,) * len(shape))

    return pl.pallas_call(
        kernel,
        out_shape=jax.ShapeDtypeStruct((B, C, T), x.dtype),
        grid=(B,),
        in_specs=[
            pl.BlockSpec((1, C, T), lambda b: (b, 0, 0)),   # x
            whole((C, 1)), whole((C, 1)),                   # groupnorm scale / bias
            whole((C, C)), whole((1, C)),                   # Wq^T, bq
            whole((C, C)), whole((1, C)),                   # Wk^T, bk
            whole((C, C)), whole((1, C)),                   # Wv^T, bv
            whole((C, C)), whole((1, C)),                   # Wp^T, bp
        ],
        out_specs=pl.BlockSpec((1, C, T), lambda b: (b, 0, 0)),
        compiler_params=pltpu.CompilerParams(
            dimension_semantics=("parallel",)),
    )(
        x,
        gn_w.reshape(C, 1), gn_b.reshape(C, 1),
        wq.T, bq.reshape(1, C),
        wk.T, bk.reshape(1, C),
        wv.T, bv.reshape(1, C),
        wp.T, bp.reshape(1, C),
    )


def self_attention_1d_ref(x, gn_w, gn_b, wq, bq, wk, bk, wv, bv, wp, bp,
                          *, num_heads=1, gn_eps=1e-5):
    """Pure-JAX reference mirroring the PyTorch forward exactly."""
    B, C, T = x.shape
    xf = x.astype(jnp.float32)
    mean = jnp.mean(xf, axis=(1, 2), keepdims=True)
    var = jnp.var(xf, axis=(1, 2), keepdims=True)
    h = (xf - mean) / jnp.sqrt(var + gn_eps)
    h = h * gn_w[None, :, None] + gn_b[None, :, None]
    h = jnp.transpose(h, (0, 2, 1))                       # (B, T, C)
    q = h @ wq.T + bq
    k = h @ wk.T + bk
    v = h @ wv.T + bv

    def split(p):                                         # (B, T, C) -> (B, H, T, d)
        return p.reshape(B, T, num_heads, C // num_heads).transpose(0, 2, 1, 3)

    qh, kh, vh = split(q), split(k), split(v)
    scale = 1.0 / math.sqrt(math.sqrt(C // num_heads))
    scores = jnp.einsum("bhtd,bhsd->bhts", qh * scale, kh * scale)
    probs = jax.nn.softmax(scores, axis=-1)
    o = jnp.einsum("bhts,bhsd->bhtd", probs, vh)
    o = o.transpose(0, 2, 1, 3).reshape(B, T, C)
    o = o @ wp.T + bp
    o = jnp.transpose(o, (0, 2, 1))                       # (B, C, T)
    return (o + xf).astype(x.dtype)


if __name__ == "__main__":
    # Small shapes consistent with the module: (batch, channels, seq)
    B, C, T = 2, 32, 16
    num_heads = 1   # module default n_head=1

    key = jax.random.PRNGKey(0)
    keys = jax.random.split(key, 11)
    x = jax.random.normal(keys[0], (B, C, T), dtype=jnp.float32)

    gn_w = 1.0 + 0.1 * jax.random.normal(keys[1], (C,), dtype=jnp.float32)
    gn_b = 0.1 * jax.random.normal(keys[2], (C,), dtype=jnp.float32)

    def lin(kw, kb):
        w = jax.random.normal(kw, (C, C), dtype=jnp.float32) * (1.0 / math.sqrt(C))
        b = 0.1 * jax.random.normal(kb, (C,), dtype=jnp.float32)
        return w, b

    wq, bq = lin(keys[3], keys[4])
    wk, bk = lin(keys[5], keys[6])
    wv, bv = lin(keys[7], keys[8])
    wp, bp = lin(keys[9], keys[10])

    out = self_attention_1d(x, gn_w, gn_b, wq, bq, wk, bk, wv, bv, wp, bp,
                            num_heads=num_heads)
    out = jax.block_until_ready(out)

    ref = self_attention_1d_ref(x, gn_w, gn_b, wq, bq, wk, bk, wv, bv, wp, bp,
                                num_heads=num_heads)
    assert out.shape == x.shape
    max_diff = jnp.max(jnp.abs(out - ref))
    # Tolerance accounts for TPU default f32 matmul precision (bf16 passes) in
    # both the kernel and the XLA reference.
    assert jnp.allclose(out, ref, atol=2e-2, rtol=2e-2), (
        f"mismatch vs reference, max abs diff = {max_diff}")
    print("KERNEL_OK")
</pallas_src>

<mosaic_0001>
module attributes {stable_mosaic.version = 11 : i64} {
  func.func @_self_attention_1d_kernel(%arg0: i32, %arg1: memref<1x32x16xf32, #tpu.memory_space<vmem>>, %arg2: memref<32x1xf32, #tpu.memory_space<vmem>>, %arg3: memref<32x1xf32, #tpu.memory_space<vmem>>, %arg4: memref<32x32xf32, #tpu.memory_space<vmem>>, %arg5: memref<1x32xf32, #tpu.memory_space<vmem>>, %arg6: memref<32x32xf32, #tpu.memory_space<vmem>>, %arg7: memref<1x32xf32, #tpu.memory_space<vmem>>, %arg8: memref<32x32xf32, #tpu.memory_space<vmem>>, %arg9: memref<1x32xf32, #tpu.memory_space<vmem>>, %arg10: memref<32x32xf32, #tpu.memory_space<vmem>>, %arg11: memref<1x32xf32, #tpu.memory_space<vmem>>, %arg12: memref<1x32x16xf32, #tpu.memory_space<vmem>>) attributes {dimension_semantics = [#tpu.dimension_semantics<parallel>], iteration_bounds = array<i64: 2>, scalar_prefetch = 0 : i64, scratch_operands = 0 : i64, tpu.core_type = #tpu.core_type<tc>, window_params = [{transform_indices = @transform_0, window_bounds = array<i64: 1, 32, 16>}, {pipeline_mode = #tpu.pipeline_mode<synchronous>, transform_indices = @transform_1, window_bounds = array<i64: 32, 1>}, {pipeline_mode = #tpu.pipeline_mode<synchronous>, transform_indices = @transform_2, window_bounds = array<i64: 32, 1>}, {pipeline_mode = #tpu.pipeline_mode<synchronous>, transform_indices = @transform_3, window_bounds = array<i64: 32, 32>}, {pipeline_mode = #tpu.pipeline_mode<synchronous>, transform_indices = @transform_4, window_bounds = array<i64: 1, 32>}, {pipeline_mode = #tpu.pipeline_mode<synchronous>, transform_indices = @transform_5, window_bounds = array<i64: 32, 32>}, {pipeline_mode = #tpu.pipeline_mode<synchronous>, transform_indices = @transform_6, window_bounds = array<i64: 1, 32>}, {pipeline_mode = #tpu.pipeline_mode<synchronous>, transform_indices = @transform_7, window_bounds = array<i64: 32, 32>}, {pipeline_mode = #tpu.pipeline_mode<synchronous>, transform_indices = @transform_8, window_bounds = array<i64: 1, 32>}, {pipeline_mode = #tpu.pipeline_mode<synchronous>, transform_indices = @transform_9, window_bounds = array<i64: 32, 32>}, {pipeline_mode = #tpu.pipeline_mode<synchronous>, transform_indices = @transform_10, window_bounds = array<i64: 1, 32>}, {transform_indices = @transform_11, window_bounds = array<i64: 1, 32, 16>}]} {
    %c0 = arith.constant 0 : index
    %c0_0 = arith.constant 0 : index
    %c0_1 = arith.constant 0 : index
    %0 = vector.load %arg1[%c0, %c0_0, %c0_1] : memref<1x32x16xf32, #tpu.memory_space<vmem>>, vector<1x32x16xf32>
    %1 = vector.shape_cast %0 : vector<1x32x16xf32> to vector<32x16xf32>
    %2 = vector.shape_cast %1 : vector<32x16xf32> to vector<1x32x16xf32>
    %cst = arith.constant dense<0.000000e+00> : vector<1xf32>
    %3 = vector.multi_reduction <add>, %2, %cst [1, 2] : vector<1x32x16xf32> to vector<1xf32>
    %4 = vector.shape_cast %3 : vector<1xf32> to vector<1x1x1xf32>
    %5 = vector.extract %4[0, 0, 0] : f32 from vector<1x1x1xf32>
    %cst_2 = arith.constant 0.001953125 : f32
    %6 = arith.mulf %5, %cst_2 : f32
    %7 = vector.broadcast %6 : f32 to vector<32x16xf32>
    %8 = arith.subf %1, %7 : vector<32x16xf32>
    %9 = arith.mulf %8, %8 : vector<32x16xf32>
    %10 = vector.shape_cast %9 : vector<32x16xf32> to vector<1x32x16xf32>
    %cst_3 = arith.constant dense<0.000000e+00> : vector<1xf32>
    %11 = vector.multi_reduction <add>, %10, %cst_3 [1, 2] : vector<1x32x16xf32> to vector<1xf32>
    %12 = vector.shape_cast %11 : vector<1xf32> to vector<1x1x1xf32>
    %13 = vector.extract %12[0, 0, 0] : f32 from vector<1x1x1xf32>
    %cst_4 = arith.constant 0.001953125 : f32
    %14 = arith.mulf %13, %cst_4 : f32
    %cst_5 = arith.constant 9.99999974E-6 : f32
    %15 = arith.addf %14, %cst_5 : f32
    %16 = math.rsqrt %15 : f32
    %17 = vector.broadcast %16 : f32 to vector<32x16xf32>
    %18 = arith.mulf %8, %17 : vector<32x16xf32>
    %c0_6 = arith.constant 0 : index
    %c0_7 = arith.constant 0 : index
    %19 = vector.load %arg2[%c0_6, %c0_7] : memref<32x1xf32, #tpu.memory_space<vmem>>, vector<32x1xf32>
    %20 = vector.broadcast %19 : vector<32x1xf32> to vector<32x16xf32>
    %21 = arith.mulf %18, %20 : vector<32x16xf32>
    %c0_8 = arith.constant 0 : index
    %c0_9 = arith.constant 0 : index
    %22 = vector.load %arg3[%c0_8, %c0_9] : memref<32x1xf32, #tpu.memory_space<vmem>>, vector<32x1xf32>
    %23 = vector.broadcast %22 : vector<32x1xf32> to vector<32x16xf32>
    %24 = arith.addf %21, %23 : vector<32x16xf32>
    %25 = tpu.transpose %24, [1, 0] : vector<32x16xf32> -> vector<16x32xf32>
    %c0_10 = arith.constant 0 : index
    %c0_11 = arith.constant 0 : index
    %26 = vector.load %arg4[%c0_10, %c0_11] : memref<32x32xf32, #tpu.memory_space<vmem>>, vector<32x32xf32>
    %cst_12 = arith.constant dense<0.000000e+00> : vector<16x32xf32>
    %27 = tpu.matmul %25, %26, %cst_12 {dimension_numbers = #tpu.dot_dimension_numbers<[1], [0], [0], [1], [0, 0, 1, 1], [], []>} : vector<16x32xf32>, vector<32x32xf32>, vector<16x32xf32> -> vector<16x32xf32>
    %c0_13 = arith.constant 0 : index
    %c0_14 = arith.constant 0 : index
    %28 = vector.load %arg5[%c0_13, %c0_14] : memref<1x32xf32, #tpu.memory_space<vmem>>, vector<1x32xf32>
    %29 = vector.broadcast %28 : vector<1x32xf32> to vector<16x32xf32>
    %30 = arith.addf %27, %29 : vector<16x32xf32>
    %c0_15 = arith.constant 0 : index
    %c0_16 = arith.constant 0 : index
    %31 = vector.load %arg6[%c0_15, %c0_16] : memref<32x32xf32, #tpu.memory_space<vmem>>, vector<32x32xf32>
    %cst_17 = arith.constant dense<0.000000e+00> : vector<16x32xf32>
    %32 = tpu.matmul %25, %31, %cst_17 {dimension_numbers = #tpu.dot_dimension_numbers<[1], [0], [0], [1], [0, 0, 1, 1], [], []>} : vector<16x32xf32>, vector<32x32xf32>, vector<16x32xf32> -> vector<16x32xf32>
    %c0_18 = arith.constant 0 : index
    %c0_19 = arith.constant 0 : index
    %33 = vector.load %arg7[%c0_18, %c0_19] : memref<1x32xf32, #tpu.memory_space<vmem>>, vector<1x32xf32>
    %34 = vector.broadcast %33 : vector<1x32xf32> to vector<16x32xf32>
    %35 = arith.addf %32, %34 : vector<16x32xf32>
    %c0_20 = arith.constant 0 : index
    %c0_21 = arith.constant 0 : index
    %36 = vector.load %arg8[%c0_20, %c0_21] : memref<32x32xf32, #tpu.memory_space<vmem>>, vector<32x32xf32>
    %cst_22 = arith.constant dense<0.000000e+00> : vector<16x32xf32>
    %37 = tpu.matmul %25, %36, %cst_22 {dimension_numbers = #tpu.dot_dimension_numbers<[1], [0], [0], [1], [0, 0, 1, 1], [], []>} : vector<16x32xf32>, vector<32x32xf32>, vector<16x32xf32> -> vector<16x32xf32>
    %c0_23 = arith.constant 0 : index
    %c0_24 = arith.constant 0 : index
    %38 = vector.load %arg9[%c0_23, %c0_24] : memref<1x32xf32, #tpu.memory_space<vmem>>, vector<1x32xf32>
    %39 = vector.broadcast %38 : vector<1x32xf32> to vector<16x32xf32>
    %40 = arith.addf %37, %39 : vector<16x32xf32>
    %cst_25 = arith.constant 0.420448214 : f32
    %41 = vector.broadcast %cst_25 : f32 to vector<16x32xf32>
    %42 = arith.mulf %30, %41 : vector<16x32xf32>
    %cst_26 = arith.constant 0.420448214 : f32
    %43 = vector.broadcast %cst_26 : f32 to vector<16x32xf32>
    %44 = arith.mulf %35, %43 : vector<16x32xf32>
    "tpu.trace_start"() <{level = 10 : i32, message = "td,sd->ts"}> : () -> ()
    %cst_27 = arith.constant dense<0.000000e+00> : vector<16x16xf32>
    %45 = tpu.matmul %42, %44, %cst_27 {dimension_numbers = #tpu.dot_dimension_numbers<[1], [1], [0], [0], [0, 0, 1, 0], [], []>} : vector<16x32xf32>, vector<16x32xf32>, vector<16x16xf32> -> vector<16x16xf32>
    "tpu.trace_stop"() : () -> ()
    %cst_28 = arith.constant dense<0xFF800000> : vector<16xf32>
    %46 = vector.multi_reduction <maximumf>, %45, %cst_28 [1] : vector<16x16xf32> to vector<16xf32>
    %47 = vector.shape_cast %46 : vector<16xf32> to vector<16x1xf32>
    %48 = vector.broadcast %47 : vector<16x1xf32> to vector<16x16xf32>
    %49 = arith.subf %45, %48 : vector<16x16xf32>
    %50 = math.exp %49 : vector<16x16xf32>
    %cst_29 = arith.constant dense<0.000000e+00> : vector<16xf32>
    %51 = vector.multi_reduction <add>, %50, %cst_29 [1] : vector<16x16xf32> to vector<16xf32>
    %52 = vector.shape_cast %51 : vector<16xf32> to vector<16x1xf32>
    %53 = vector.broadcast %52 : vector<16x1xf32> to vector<16x16xf32>
    %54 = arith.divf %50, %53 : vector<16x16xf32>
    %cst_30 = arith.constant dense<0.000000e+00> : vector<16x32xf32>
    %55 = tpu.matmul %54, %40, %cst_30 {dimension_numbers = #tpu.dot_dimension_numbers<[1], [0], [0], [1], [0, 0, 1, 1], [], []>} : vector<16x16xf32>, vector<16x32xf32>, vector<16x32xf32> -> vector<16x32xf32>
    %c0_31 = arith.constant 0 : index
    %c0_32 = arith.constant 0 : index
    %56 = vector.load %arg10[%c0_31, %c0_32] : memref<32x32xf32, #tpu.memory_space<vmem>>, vector<32x32xf32>
    %cst_33 = arith.constant dense<0.000000e+00> : vector<16x32xf32>
    %57 = tpu.matmul %55, %56, %cst_33 {dimension_numbers = #tpu.dot_dimension_numbers<[1], [0], [0], [1], [0, 0, 1, 1], [], []>} : vector<16x32xf32>, vector<32x32xf32>, vector<16x32xf32> -> vector<16x32xf32>
    %c0_34 = arith.constant 0 : index
    %c0_35 = arith.constant 0 : index
    %58 = vector.load %arg11[%c0_34, %c0_35] : memref<1x32xf32, #tpu.memory_space<vmem>>, vector<1x32xf32>
    %59 = vector.broadcast %58 : vector<1x32xf32> to vector<16x32xf32>
    %60 = arith.addf %57, %59 : vector<16x32xf32>
    %61 = tpu.transpose %60, [1, 0] : vector<16x32xf32> -> vector<32x16xf32>
    %62 = arith.addf %61, %1 : vector<32x16xf32>
    %c0_36 = arith.constant 0 : index
    %c0_37 = arith.constant 0 : index
    %c0_38 = arith.constant 0 : index
    %63 = vector.load %arg12[%c0_36, %c0_37, %c0_38] : memref<1x32x16xf32, #tpu.memory_space<vmem>>, vector<1x32x16xf32>
    %64 = vector.shape_cast %63 : vector<1x32x16xf32> to vector<32x16xf32>
    %65 = vector.shape_cast %62 : vector<32x16xf32> to vector<1x32x16xf32>
    tpu.vector_store %arg12[%c0_36, %c0_37, %c0_38], %65 {strides = array<i32>} : memref<1x32x16xf32, #tpu.memory_space<vmem>>, vector<1x32x16xf32>,
    return
  }
  func.func @transform_0(%arg0: i32) -> (i32, i32, i32) {
    %c0_i32 = arith.constant 0 : i32
    %c0_i32_0 = arith.constant 0 : i32
    %c0_i32_1 = arith.constant 0 : i32
    return %arg0, %c0_i32, %c0_i32_0 : i32, i32, i32
  }
  func.func @transform_1(%arg0: i32) -> (i32, i32) {
    %c0_i32 = arith.constant 0 : i32
    %c0_i32_0 = arith.constant 0 : i32
    %c0_i32_1 = arith.constant 0 : i32
    return %c0_i32, %c0_i32_0 : i32, i32
  }
  func.func @transform_2(%arg0: i32) -> (i32, i32) {
    %c0_i32 = arith.constant 0 : i32
    %c0_i32_0 = arith.constant 0 : i32
    %c0_i32_1 = arith.constant 0 : i32
    return %c0_i32, %c0_i32_0 : i32, i32
  }
  func.func @transform_3(%arg0: i32) -> (i32, i32) {
    %c0_i32 = arith.constant 0 : i32
    %c0_i32_0 = arith.constant 0 : i32
    %c0_i32_1 = arith.constant 0 : i32
    return %c0_i32, %c0_i32_0 : i32, i32
  }
  func.func @transform_4(%arg0: i32) -> (i32, i32) {
    %c0_i32 = arith.constant 0 : i32
    %c0_i32_0 = arith.constant 0 : i32
    %c0_i32_1 = arith.constant 0 : i32
    return %c0_i32, %c0_i32_0 : i32, i32
  }
  func.func @transform_5(%arg0: i32) -> (i32, i32) {
    %c0_i32 = arith.constant 0 : i32
    %c0_i32_0 = arith.constant 0 : i32
    %c0_i32_1 = arith.constant 0 : i32
    return %c0_i32, %c0_i32_0 : i32, i32
  }
  func.func @transform_6(%arg0: i32) -> (i32, i32) {
    %c0_i32 = arith.constant 0 : i32
    %c0_i32_0 = arith.constant 0 : i32
    %c0_i32_1 = arith.constant 0 : i32
    return %c0_i32, %c0_i32_0 : i32, i32
  }
  func.func @transform_7(%arg0: i32) -> (i32, i32) {
    %c0_i32 = arith.constant 0 : i32
    %c0_i32_0 = arith.constant 0 : i32
    %c0_i32_1 = arith.constant 0 : i32
    return %c0_i32, %c0_i32_0 : i32, i32
  }
  func.func @transform_8(%arg0: i32) -> (i32, i32) {
    %c0_i32 = arith.constant 0 : i32
    %c0_i32_0 = arith.constant 0 : i32
    %c0_i32_1 = arith.constant 0 : i32
    return %c0_i32, %c0_i32_0 : i32, i32
  }
  func.func @transform_9(%arg0: i32) -> (i32, i32) {
    %c0_i32 = arith.constant 0 : i32
    %c0_i32_0 = arith.constant 0 : i32
    %c0_i32_1 = arith.constant 0 : i32
    return %c0_i32, %c0_i32_0 : i32, i32
  }
  func.func @transform_10(%arg0: i32) -> (i32, i32) {
    %c0_i32 = arith.constant 0 : i32
    %c0_i32_0 = arith.constant 0 : i32
    %c0_i32_1 = arith.constant 0 : i32
    return %c0_i32, %c0_i32_0 : i32, i32
  }
  func.func @transform_11(%arg0: i32) -> (i32, i32, i32) {
    %c0_i32 = arith.constant 0 : i32
    %c0_i32_0 = arith.constant 0 : i32
    %c0_i32_1 = arith.constant 0 : i32
    return %arg0, %c0_i32, %c0_i32_0 : i32, i32, i32
  }
}

</mosaic_0001>

<bundles_post_ra>
// kernel: tpu_custom_call.1
= control target key start
LH: loop header
LB: loop body
LE: loop exit
PB: predicated region body
PF: predicated region fallthrough
CT: control target
= control target key end

     0   :  { %s1026_s17 = smov 0   ;;  %s1204_s0 = inlined_call_operand.vmem [shape: f32[2,32,16], index: 0, kind: input, shape index: {}]   ;;  %s1205_s1 = inlined_call_operand.vmem [shape: f32[32,1], index: 1, kind: input, shape index: {}]   ;;  %s1206_s2 = inlined_call_operand.vmem [shape: f32[32,1], index: 2, kind: input, shape index: {}]   ;;  %s1207_s3 = inlined_call_operand.vmem [shape: f32[32,32], index: 3, kind: input, shape index: {}]   ;;  %s1208_s4 = inlined_call_operand.vmem [shape: f32[1,32], index: 4, kind: input, shape index: {}]   ;;  %s1209_s5 = inlined_call_operand.vmem [shape: f32[32,32], index: 5, kind: input, shape index: {}]   ;;  %s1210_s6 = inlined_call_operand.vmem [shape: f32[1,32], index: 6, kind: input, shape index: {}]   ;;  %s1211_s7 = inlined_call_operand.vmem [shape: f32[32,32], index: 7, kind: input, shape index: {}]   ;;  %s1212_s8 = inlined_call_operand.vmem [shape: f32[1,32], index: 8, kind: input, shape index: {}]   ;;  %s1213_s9 = inlined_call_operand.vmem [shape: f32[32,32], index: 9, kind: input, shape index: {}]   ;;  %s1214_s10 = inlined_call_operand.vmem [shape: f32[1,32], index: 10, kind: input, shape index: {}]   ;;  %s1215_s11 = inlined_call_operand.vmem [shape: f32[2,32,16], index: 11, kind: output, shape index: {}]  }
   0x1 LB: > { %s889_s18 = sadd.s32 4294967295, %s963_s17   ;;  %p893_p0 = scmp.ge.s32.totalorder %s963_s17, 1  ;;  %s963_s17 = sphi %s1026_s17, %s21_s17  }
   0x2   : > { %p337_p1 = scmp.lt.s32.totalorder %s963_s17, 3 }
   0x4   : > { %p338_p2 = pnand %p893_p0, %p337_p1 }
   0x5   : > { %p377_p3 = scmp.lt.s32.totalorder (!%p338_p2), %s889_s18, 1 }
   0x6   : > { %341 = sbr.rel (%p338_p2) target bundleno = 1608 (0x648), region = 64 }
   0xb   : > { %s1217_s18 = smov (!%p377_p3, %s889_s18), 1  ;;  %vm391_vm0 = vcmask 130048   ;;  %v453_v18 = vld [vmem:[%s1205_s1] sm:$0xff]  ;;  %v965_v19 = vmov 0   ;;  %v483_v37 = vld [vmem:[%s1206_s2 + $0x10] sm:$0xff]  ;;  %v454_v39 = vld [vmem:[%s1205_s1 + $0x8] sm:$0xff] }
   0xc   : > { %s914_s19 = sshll.u32 %s1217_s18, 5  ;;  %940 = vset.pattern.permute.xlu1 %v965_v19  ;;  %942 = vset.pattern.permute.xlu0 %v965_v19  ;;  %v481_v36 = vld [vmem:[%s1206_s2] sm:$0xff]  ;;  %v455_v38 = vld [vmem:[%s1205_s1 + $0x10] sm:$0xff]  ;;  %v484_v40 = vld [vmem:[%s1206_s2 + $0x18] sm:$0xff]  ;;  %vm549_vm4 = vcmask 261120  }
   0xd   : > { %s381_s22 = scalar_lea.vmem %s1204_s0, %s914_s19  ;;  %459 = vperm.xlu1 %940, %v453_v18   ;;  %941 = vset.pattern.permute.xlu2 %v965_v19  ;;  %v482_v41 = vld [vmem:[%s1206_s2 + $0x8] sm:$0xff]  ;;  %v456_v42 = vld [vmem:[%s1205_s1 + $0x18] sm:$0xff]  ;;  %v543_v61 = vld [vmem:[%s1207_s3 + $0x10] sm:$0xff]  ;;  %s386_s23 = scalar_lea.vmem %s1215_s11, %s914_s19 }
   0xe   : > { %v1042_v0 = vld [vmem:[%s381_s22] sm:$0xff]  ;;  %v1044_v1 = vld [vmem:[%s381_s22 + $0x8] sm:$0xff]  ;;  %v1046_v2 = vld [vmem:[%s381_s22 + $0x10] sm:$0xff]  ;;  %464 = vperm.xlu2 %941, %v454_v39  }
   0xf   : > { %v1048_v3 = vld [vmem:[%s381_s22 + $0x18] sm:$0xff]  ;;  %v392_v4 = vsel %vm391_vm0, %v1042_v0, 0.0  ;;  %v393_v5 = vsel %vm391_vm0, %v1044_v1, 0.0  ;;  %v395_v6 = vsel %vm391_vm0, %v1046_v2, 0.0  ;;  %v581_v63 = vld [vmem:[%s1209_s5 + $0x10] sm:$0xff] }
  0x10   : > { %v394_v7 = vadd.f32 %v393_v5, %v392_v4  ;;  %v397_v8 = vsel %vm391_vm0, %v1048_v3, 0.0  ;;  %v544_v59 = vld [vmem:[%s1207_s3 + $0x18] sm:$0xff]  ;;  %v542_v5 = vld [vmem:[%s1207_s3 + $0x8] sm:$0xff] }
  0x11   : > { %v582_v60 = vld [vmem:[%s1209_s5 + $0x18] sm:$0xff]  ;;  %568 = vmatpush.msra.mxu0 %v544_v59  ;;  %916 = vmatpush.msra.mxu2 %v544_v59 }
  0x12   : > { %v396_v9 = vadd.f32 %v395_v6, %v394_v7  ;;  %599 = vmatpush.msra.mxu1 %v582_v60  ;;  %v580_v6 = vld [vmem:[%s1209_s5 + $0x8] sm:$0xff]  ;;  %920 = vmatpush.msra.mxu3 %v582_v60 }
  0x13   : > { %569 = vmatpush.msra.mxu0 %v543_v61  ;;  %917 = vmatpush.msra.mxu2 %v543_v61 }
  0x14   : > { %v398_v10 = vadd.f32 %v397_v8, %v396_v9  ;;  %600 = vmatpush.msra.mxu1 %v581_v63  ;;  %v541_v9 = vld [vmem:[%s1207_s3] sm:$0xff]  ;;  %921 = vmatpush.msra.mxu3 %v581_v63 }
  0x15   : > { %487 = vperm.xlu1 %940, %v481_v36   ;;  %570 = vmatpush.msra.mxu0 %v542_v5 }
  0x16   : > { %399 = vadd.xlane.f32.xlu0 %v398_v10  ;;  %492 = vperm.xlu2 %941, %v482_v41   ;;  %v579_v10 = vld [vmem:[%s1209_s5] sm:$0xff] }
  0x17   : > { %601 = vmatpush.msra.mxu1 %v580_v6  ;;  %571 = vmatpush.msra.mxu0 %v541_v9 }
  0x18   : > { %918 = vmatpush.msra.mxu2 %v542_v5  ;;  %922 = vmatpush.msra.mxu3 %v580_v6  ;;  %v760_v6 = vld [vmem:[%s1213_s9 + $0x18] sm:$0xff] }
  0x19   : > { %602 = vmatpush.msra.mxu1 %v579_v10 }
  0x1a   : > { %919 = vmatpush.msra.mxu2 %v541_v9  ;;  %923 = vmatpush.msra.mxu3 %v579_v10 }
  0x1b   : > { %783 = vmatpush.msrb.mxu1 %v760_v6 }
  0x1d   : > { %497 = vperm.xlu1 %940, %v483_v37  }
  0x1e   : > { %474 = vperm.xlu2 %941, %v456_v42  }
  0x25   : > { %502 = vperm.xlu1 %940, %v484_v40  }
  0x68   : > { %v465_v7 = vpop.permute.xlu2 %464 }
  0x7f   : > { %v460_v58 = vpop.permute.xlu1 %459 }
  0x89   : > { %v400_v11 = vpop.xlane.xlu0 %399 }
  0x8a   : > { %v401_v12 = vrot.slane %v400_v11, 4 }
  0x8c   : > { %v402_v13 = vadd.f32 %v401_v12, %v400_v11  ;;  %v488_v11 = vpop.permute.xlu1 %487 }
  0x8e   : > { %v403_v14 = vrot.slane %v402_v13, 2 }
  0x90   : > { %v404_v15 = vadd.f32 %v403_v14, %v402_v13 }
  0x92   : > { %v405_v16 = vrot.slane %v404_v15, 1 }
  0x94   : > { %v406_v17 = vadd.f32 %v405_v16, %v404_v15  ;;  %v493_v15 = vpop.permute.xlu2 %492 }
  0x96   : > { %924 = vpush %v406_v17 }
  0xc7   : > { %s925_s25 = spop %924 }
  0xc8   : > { %s408_s26 = smul.f32 0.001953125, %s925_s25 }
  0xca   : > { %v409_v20 = vstv %s408_s26 }
  0xcb   : > { %v1062_v21 = vsub.f32 %v1042_v0, %v409_v20  ;;  %v1065_v22 = vsub.f32 %v1044_v1, %v409_v20  ;;  %v1068_v23 = vsub.f32 %v1046_v2, %v409_v20  ;;  %v1071_v24 = vsub.f32 %v1048_v3, %v409_v20  ;;  %v498_v20 = vpop.permute.xlu1 %497 }
  0xcd   : > { %v414_v25 = vmul.f32 %v1062_v21, %v1062_v21  ;;  %v415_v26 = vmul.f32 %v1065_v22, %v1065_v22  ;;  %v416_v27 = vmul.f32 %v1068_v23, %v1068_v23  ;;  %v417_v28 = vmul.f32 %v1071_v24, %v1071_v24 }
  0xcf   : > { %v418_v29 = vsel %vm391_vm0, %v414_v25, 0.0  ;;  %v419_v30 = vsel %vm391_vm0, %v415_v26, 0.0  ;;  %v421_v32 = vsel %vm391_vm0, %v416_v27, 0.0  ;;  %v423_v34 = vsel %vm391_vm0, %v417_v28, 0.0  ;;  %v475_v25 = vpop.permute.xlu2 %474 }
  0xd0   : > { %v420_v31 = vadd.f32 %v419_v30, %v418_v29  ;;  %v613_v29 = vld [vmem:[%s1211_s7 + $0x18] sm:$0xff]  ;;  %v610_v30 = vld [vmem:[%s1211_s7] sm:$0xff] }
  0xd1   : > { %630 = vmatpush.msrb.mxu2 %v613_v29 }
  0xd2   : > { %v422_v33 = vadd.f32 %v421_v32, %v420_v31 }
  0xd3   : > { %v503_v27 = vpop.permute.xlu1 %502 }
  0xd4   : > { %v424_v35 = vadd.f32 %v423_v34, %v422_v33  ;;  %v944_v33 = vld [vmem:[%s1210_s6] ss:$0 sm:$0xff] }
  0xd6   : > { %425 = vadd.xlane.f32.xlu0 %v424_v35 }
  0xea   : > { %469 = vperm.xlu0 %942, %v455_v38   ;;  %v943_v38 = vld [vmem:[%s1208_s4] ss:$0 sm:$0xff] }
 0x149   : > { %v426_v43 = vpop.xlane.xlu0 %425 }
 0x14a   : > { %v427_v44 = vrot.slane %v426_v43, 4 }
 0x14c   : > { %v428_v45 = vadd.f32 %v427_v44, %v426_v43 }
 0x14e   : > { %v429_v46 = vrot.slane %v428_v45, 2 }
 0x150   : > { %v430_v47 = vadd.f32 %v429_v46, %v428_v45 }
 0x152   : > { %v431_v48 = vrot.slane %v430_v47, 1 }
 0x154   : > { %v432_v49 = vadd.f32 %v431_v48, %v430_v47  ;;  %v945_v47 = vld [vmem:[%s1212_s8] ss:$0 sm:$0xff] }
 0x156   : > { %926 = vpush %v432_v49 }
 0x15c   : > { %v470_v18 = vpop.permute.xlu0 %469 }
 0x187   : > { %s927_s25 = spop %926 }
 0x188   : > { %s434_s26 = smul.f32 0.001953125, %s927_s25 }
 0x18a   : > { %s435_s27 = sadd.f32 1e-05, %s434_s26 }
 0x18c   : > { %v436_v50 = vstv %s435_s27 }
 0x18d   : > { %947 = vrsqrt.f32 %v436_v50  ;;  %vm443_vm2 = vweird.f32 %v436_v50 }
 0x193   : > { %v948_v51 = vpop.eup %947 }
 0x194   : > { %v438_v52 = vmul.f32 %v948_v51, %v436_v50  ;;  %vm444_vm1 = vweird.f32 %v948_v51 }
 0x195   : > { %vm445_vm3 = vmor %vm443_vm2, %vm444_vm1 }
 0x196   : > { %v439_v53 = vmul.f32 %v948_v51, %v438_v52 }
 0x198   : > { %v440_v54 = vmul.f32 0.5, %v439_v53 }
 0x19a   : > { %v441_v55 = vsub.f32 1.5, %v440_v54 }
 0x19c   : > { %v442_v56 = vmul.f32 %v948_v51, %v441_v55 }
 0x19e   : > { %v446_v57 = vsel %vm445_vm3, %v948_v51, %v442_v56 }
 0x19f   : > { %928 = vpush %v446_v57 }
 0x1d0   : > { %s929_s28 = spop %928 }
 0x1d1   : > { %v448_v62 = vstv %s929_s28 }
 0x1d2   : > { %v449_v4 = vmul.f32 %v448_v62, %v1062_v21  ;;  %v450_v12 = vmul.f32 %v448_v62, %v1065_v22  ;;  %v451_v16 = vmul.f32 %v448_v62, %v1068_v23  ;;  %v452_v21 = vmul.f32 %v448_v62, %v1071_v24  ;;  %v612_v23 = vld [vmem:[%s1211_s7 + $0x10] sm:$0xff]  ;;  %v611_v24 = vld [vmem:[%s1211_s7 + $0x8] sm:$0xff] }
 0x1d3   : > { %631 = vmatpush.msrb.mxu2 %v612_v23 }
 0x1d4   : > { %v477_v8 = vmul.f32 %v460_v58, %v449_v4  ;;  %v478_v14 = vmul.f32 %v465_v7, %v450_v12  ;;  %v479_v19 = vmul.f32 %v470_v18, %v451_v16  ;;  %v480_v26 = vmul.f32 %v475_v25, %v452_v21  ;;  %v759_v7 = vld [vmem:[%s1213_s9 + $0x10] sm:$0xff] }
 0x1d5   : > { %632 = vmatpush.msrb.mxu2 %v611_v24  ;;  %784 = vmatpush.msrb.mxu1 %v759_v7 }
 0x1d6   : > { %v505_v13 = vadd.f32 %v488_v11, %v477_v8  ;;  %v506_v17 = vadd.f32 %v493_v15, %v478_v14  ;;  %v507_v22 = vadd.f32 %v498_v20, %v479_v19  ;;  %v508_v28 = vadd.f32 %v503_v27, %v480_v26  ;;  %v758_v8 = vld [vmem:[%s1213_s9 + $0x8] sm:$0xff] }
 0x1d7   : > { %633 = vmatpush.msrb.mxu2 %v610_v30  ;;  %785 = vmatpush.msrb.mxu1 %v758_v8 }
 0x1d8   : > { %509 = vxpose.xlu2.b32.start [1/4] (short) (narrow) %v505_v13, 16 }
 0x1e0   : > { %510 = vxpose.xlu2.b32.cont [2/4] (short) (narrow) %v506_v17, 16 }
 0x1e8   : > { %511 = vxpose.xlu2.b32.cont [3/4] (short) (narrow) %v507_v22, 16 }
 0x1f0   : > { %512 = vxpose.xlu2.b32.end [4/4] (short) (narrow) %v508_v28, 16 }
 0x271   : > { %v525_v31 = vpop.trf.xlu2 }
 0x272   : > { %898 = vmatmul.msk.f32.vlgmr.msra.gmra.mxu0 %vm549_vm4, %v525_v31  ;;  %900 = vmatmul.msk.f32.vlgmr.msra.gmra.mxu1 %vm549_vm4, %v525_v31 }
 0x279   : > { %v526_v32 = vpop.trf.xlu2 }
 0x27a   : > { %899 = vmatmul.msk.f32.vlgmr.msra.gmra.mxu2 %vm549_vm4, %v526_v32  ;;  %901 = vmatmul.msk.f32.vlgmr.msra.gmra.mxu3 %vm549_vm4, %v526_v32 }
 0x282   : > { %902 = vmatmul.msk.f32.vlgmr.msrb.gmra.mxu2 %vm549_vm4, %v525_v31 }
 0x28a   : > { %903 = vmatmul.msk.f32.gmra.mxu2 %vm549_vm4, %v526_v32 }
 0x2ef   : > { %v604_v34 = vpop.f32.mrf.mxu1  ;;  %v573_v39 = vpop.f32.mrf.mxu0 }
 0x2f0   : > { %v605_v40 = vadd.f32 %v944_v33, %v604_v34  ;;  %v574_v42 = vadd.f32 %v943_v38, %v573_v39 }
 0x2f2   : > { %v643_v43 = vmul.f32 0.4204482, %v605_v40  ;;  %v641_v45 = vmul.f32 0.4204482, %v574_v42 }
 0x2fd   : > { %v576_v35 = vpop.f32.mrf.mxu2  ;;  %v607_v36 = vpop.f32.mrf.mxu3 }
 0x2fe   : > { %v608_v37 = vadd.f32 %v944_v33, %v607_v36  ;;  %v577_v46 = vadd.f32 %v943_v38, %v576_v35  ;;  %v757_v33 = vld [vmem:[%s1213_s9] sm:$0xff] }
 0x2ff   : > { %786 = vmatpush.msrb.mxu1 %v757_v33  ;;  %v946_v36 = vld [vmem:[%s1214_s10] ss:$0 sm:$0xff] }
 0x300   : > { %v644_v41 = vmul.f32 0.4204482, %v608_v37  ;;  %v642_v50 = vmul.f32 0.4204482, %v577_v46 }
 0x302   : > { %904 = vmatpush.xpose.msk.msrb.mxu3 %vm549_vm4, %v644_v41 }
 0x305   : > { %v635_v44 = vpop.f32.mrf.mxu2 }
 0x306   : > { %905 = vmatpush.xpose.msk.msrb.mxu3 %vm549_vm4, %v643_v43  ;;  %v636_v51 = vadd.f32 %v945_v47, %v635_v44 }
 0x309   : > { %906 = vmatmul.msk.f32.vlgmr.msrb.gmra.mxu3 %vm549_vm4, %v641_v45 }
 0x30d   : > { %v638_v48 = vpop.f32.mrf.mxu2 }
 0x30e   : > { %v639_v49 = vadd.f32 %v945_v47, %v638_v48 }
 0x310   : > { %748 = vmatpush.msrb.mxu0 %v639_v49 }
 0x311   : > { %907 = vmatmul.msk.f32.gmra.mxu3 %vm549_vm4, %v642_v50 }
 0x312   : > { %749 = vmatpush.msrb.mxu0 %v636_v51 }
 0x38c   : > { %v674_v52 = vpop.f32.mrf.mxu3 }
 0x38d   : > { %v680_v53 = vsel %vm391_vm0, %v674_v52, -inf }
 0x38e   : > { %681 = vmax.xlane.f32.xlu1 %v680_v53 }
 0x394   : > { %v677_v54 = vpop.f32.mrf.mxu3 }
 0x395   : > { %v683_v55 = vsel %vm391_vm0, %v677_v54, -inf }
 0x396   : > { %684 = vmax.xlane.f32.xlu0 %v683_v55 }
 0x401   : > { %v682_v56 = vpop.xlane.xlu1 %681 }
 0x402   : > { %v686_v57 = vsub.f32 %v674_v52, %v682_v56 }
 0x404   : > { %v688_v58 = vmul.f32 1.442695, %v686_v57 }
 0x406   : > { %949 = vpow2.f32 %v688_v58 }
 0x409   : > { %v685_v59 = vpop.xlane.xlu0 %684 }
 0x40a   : > { %v687_v60 = vsub.f32 %v677_v54, %v685_v59 }
 0x40c   : > { %v950_v61 = vpop.eup %949  ;;  %v690_v62 = vmul.f32 1.442695, %v687_v60 }
 0x40d   : > { %v692_v63 = vsel %vm391_vm0, %v950_v61, 0.0 }
 0x40e   : > { %951 = vpow2.f32 %v690_v62  ;;  %693 = vadd.xlane.f32.xlu1 %v692_v63 }
 0x414   : > { %v952_v4 = vpop.eup %951 }
 0x415   : > { %v695_v5 = vsel %vm391_vm0, %v952_v4, 0.0 }
 0x416   : > { %696 = vadd.xlane.f32.xlu1 %v695_v5 }
 0x481   : > { %v694_v9 = vpop.xlane.xlu1 %693 }
 0x482   : > { %953 = vrcp.f32 %v694_v9  ;;  %v709_v14 = vand.u32 2147483648, %v694_v9  ;;  %v707_v16 = vand.u32 2147483647, %v694_v9  ;;  %vm703_vm6 = vweird.f32 %v694_v9 }
 0x484   : > { %v710_v19 = vor.u32 1.1754944e-38, %v709_v14  ;;  %vm708_vm8 = vcmp.eq.f32.partialorder %v707_v16, 8.507059e+37 }
 0x488   : > { %v954_v10 = vpop.eup %953 }
 0x489   : > { %v699_v11 = vmul.f32 %v954_v10, %v694_v9  ;;  %v697_v12 = vpop.xlane.xlu1 %696  ;;  %vm704_vm5 = vweird.f32 %v954_v10 }
 0x48a   : > { %955 = vrcp.f32 %v697_v12  ;;  %vm705_vm7 = vmor %vm703_vm6, %vm704_vm5  ;;  %v724_v27 = vand.u32 2147483648, %v697_v12  ;;  %v722_v29 = vand.u32 2147483647, %v697_v12  ;;  %vm718_vm10 = vweird.f32 %v697_v12 }
 0x48b   : > { %v700_v13 = vsub.f32 1.0, %v699_v11 }
 0x48c   : > { %v725_v24 = vor.u32 1.1754944e-38, %v724_v27  ;;  %vm723_vm12 = vcmp.eq.f32.partialorder %v722_v29, 8.507059e+37 }
 0x48d   : > { %v701_v15 = vmul.f32 %v954_v10, %v700_v13 }
 0x48f   : > { %v702_v17 = vadd.f32 %v954_v10, %v701_v15 }
 0x490   : > { %v956_v18 = vpop.eup %955 }
 0x491   : > { %v714_v20 = vmul.f32 %v956_v18, %v697_v12  ;;  %v706_v21 = vsel %vm705_vm7, %v954_v10, %v702_v17  ;;  %vm719_vm9 = vweird.f32 %v956_v18 }
 0x492   : > { %v711_v22 = vsel %vm708_vm8, %v710_v19, %v706_v21  ;;  %vm720_vm11 = vmor %vm718_vm10, %vm719_vm9 }
 0x493   : > { %v715_v25 = vsub.f32 1.0, %v714_v20  ;;  %v712_v26 = vmul.f32 %v950_v61, %v711_v22 }
 0x495   : > { %v716_v28 = vmul.f32 %v956_v18, %v715_v25  ;;  %908 = vmatmul.msk.f32.vlgmr.msrb.gmra.mxu0 %vm391_vm0, %v712_v26 }
 0x497   : > { %v717_v23 = vadd.f32 %v956_v18, %v716_v28 }
 0x499   : > { %v721_v30 = vsel %vm720_vm11, %v956_v18, %v717_v23 }
 0x49a   : > { %v726_v31 = vsel %vm723_vm12, %v725_v24, %v721_v30 }
 0x49b   : > { %v727_v32 = vmul.f32 %v952_v4, %v726_v31 }
 0x49d   : > { %909 = vmatmul.msk.f32.gmra.mxu0 %vm391_vm0, %v727_v32 }
 0x512   : > { %v751_v34 = vpop.f32.mrf.mxu0 }
 0x513   : > { %910 = vmatmul.msk.f32.vlgmr.msrb.gmra.mxu1 %vm549_vm4, %v751_v34 }
 0x51a   : > { %v754_v35 = vpop.f32.mrf.mxu0 }
 0x51b   : > { %911 = vmatmul.msk.f32.gmra.mxu1 %vm549_vm4, %v754_v35 }
 0x590   : > { %v788_v37 = vpop.f32.mrf.mxu1 }
 0x591   : > { %v789_v38 = vadd.f32 %v946_v36, %v788_v37 }
 0x593   : > { %794 = vxpose.xlu2.b32.start [1/2] (short) (narrow) %v789_v38, 32 }
 0x598   : > { %v791_v39 = vpop.f32.mrf.mxu1 }
 0x599   : > { %v792_v40 = vadd.f32 %v946_v36, %v791_v39 }
 0x59b   : > { %795 = vxpose.xlu2.b32.end [2/2] (short) (narrow) %v792_v40, 32 }
 0x62c   : > { %v810_v41 = vpop.trf.xlu2 }
 0x62d   : > { %v826_v42 = vadd.f32 %v810_v41, %v1042_v0 }
 0x62f   : > { %830 = vst.msk [vmem:[%s386_s23] sm:$0xff] %vm391_vm0, %v826_v42 }
 0x634   : > { %v811_v43 = vpop.trf.xlu2 }
 0x635   : > { %v827_v44 = vadd.f32 %v811_v43, %v1044_v1 }
 0x637   : > { %831 = vst.msk [vmem:[%s386_s23 + $0x8] sm:$0xff] %vm391_vm0, %v827_v44 }
 0x63c   : > { %v812_v45 = vpop.trf.xlu2 }
 0x63d   : > { %v828_v46 = vadd.f32 %v812_v45, %v1046_v2 }
 0x63f   : > { %832 = vst.msk [vmem:[%s386_s23 + $0x10] sm:$0xff] %vm391_vm0, %v828_v46 }
 0x644   : > { %v813_v47 = vpop.trf.xlu2 }
 0x645   : > { %v829_v48 = vadd.f32 %v813_v47, %v1048_v3 }
 0x647   : > { %833 = vst.msk [vmem:[%s386_s23 + $0x18] sm:$0xff] %vm391_vm0, %v829_v48 }
 0x648 PF: > { %s21_s17 = sadd.s32 1, %s963_s17  }
 0x649   : > { %p18_p4 = scmp.ge.s32.totalorder %s21_s17, 4  }
 0x64b   :  { %20 = sbr.rel (!%p18_p4) target bundleno = 1 (0x1), region = 94 }

</bundles_post_ra>
